<compile_context>
chip_gen: v7x
topology: tpu7x:2x2x1
jax: 0.10.0
libtpu: 0.0.40
codegen_flags: <defaults>
</compile_context>

<pallas_src>
import functools

import jax
import jax.numpy as jnp
from jax.experimental import pallas as pl
from jax.experimental.pallas import tpu as pltpu


def _cdiv(a: int, b: int) -> int:
    return (a + b - 1) // b


def _round_up(x: int, m: int) -> int:
    return ((x + m - 1) // m) * m


def _has_bf16_eup() -> bool:
    """bf16 transcendental unit exists on v6e / v7x (not v5e and older)."""
    try:
        kind = jax.devices()[0].device_kind.lower()
    except Exception:
        return False
    return any(tag in kind for tag in ("v6", "v7", "7x"))


def _vmem_capacity_bytes() -> int:
    try:
        return int(pltpu.get_tpu_info().vmem_capacity_bytes)
    except Exception:
        return 64 * 1024 * 1024  # conservative: v7x per-TensorCore VMEM


# ----------------------------- kernels --------------------------------------


def _rh_kernel_resident(x_ref, w1_ref, b1_ref, w2_ref, b2_ref, o_ref, *, bf16_tanh):
    # x = dropout(x) -> identity at inference
    x = x_ref[...]                                            # (TB, Hp) bf16
    h = jnp.dot(x, w1_ref[...], preferred_element_type=jnp.float32)
    h = h + b1_ref[...].astype(jnp.float32)                   # (1, Hp) broadcast
    if bf16_tanh:
        h = jnp.tanh(h.astype(jnp.bfloat16))                  # bf16 EUP (v6e/v7x)
    else:
        h = jnp.tanh(h)                                       # f32 EUP (v5e)
    # h = dropout(h) -> identity at inference
    h = h.astype(w2_ref.dtype)
    out = jnp.dot(h, w2_ref[...], preferred_element_type=jnp.float32)
    out = out + b2_ref[...].astype(jnp.float32)
    o_ref[...] = out.astype(o_ref.dtype)                      # lane-dense (TB, Lp)


def _rh_kernel_ktiled(x_ref, w1_ref, b1_ref, w2_ref, b2_ref, o_ref, acc_ref, *, bf16_tanh):
    # Hidden dim tiled: per step compute the THk-wide slice of the tanh
    # activation and accumulate its out_proj contribution in f32 scratch.
    k = pl.program_id(1)

    @pl.when(k == 0)
    def _():
        acc_ref[...] = jnp.zeros_like(acc_ref)

    h = jnp.dot(x_ref[...], w1_ref[...], preferred_element_type=jnp.float32)
    h = h + b1_ref[...].astype(jnp.float32)
    if bf16_tanh:
        h = jnp.tanh(h.astype(jnp.bfloat16))
    else:
        h = jnp.tanh(h)
    h = h.astype(w2_ref.dtype)
    acc_ref[...] += jnp.dot(h, w2_ref[...], preferred_element_type=jnp.float32)

    @pl.when(k == pl.num_programs(1) - 1)
    def _():
        out = acc_ref[...] + b2_ref[...].astype(jnp.float32)
        o_ref[...] = out.astype(o_ref.dtype)


# --------------------------- param preparation -------------------------------


def prepare_regression_head_params(dense_w, dense_b, out_w, out_b,
                                    param_dtype=jnp.bfloat16):
    """One-time parameter prep (call once, reuse across invocations).

    torch nn.Linear stores weights [out, in]; the kernel wants [in, out].
    Both the hidden dim H and the label dim L are zero-padded to multiples of
    128 so every kernel load/store is lane-dense. Zero padding is inert:
    padded b1 lanes are 0 -> tanh(0)=0 -> multiplied by zero w2 rows.
    """
    H = dense_w.shape[1]
    L = out_w.shape[0]
    Hp = max(128, _round_up(H, 128))
    Lp = max(128, _round_up(L, 128))

    w1 = jnp.zeros((Hp, Hp), param_dtype).at[:H, :H].set(
        jnp.asarray(dense_w, param_dtype).T)                       # [Hp, Hp]
    b1 = jnp.zeros((1, Hp), param_dtype).at[:, :H].set(
        jnp.asarray(dense_b, param_dtype).reshape(1, H))           # [1, Hp]
    w2 = jnp.zeros((Hp, Lp), param_dtype).at[:H, :L].set(
        jnp.asarray(out_w, param_dtype).T)                         # [Hp, Lp]
    b2 = jnp.zeros((1, Lp), param_dtype).at[:, :L].set(
        jnp.asarray(out_b, param_dtype).reshape(1, L))             # [1, Lp]
    return (w1, b1, w2, b2), L


# ------------------------------- wrapper -------------------------------------


@functools.partial(jax.jit, static_argnames=("num_labels", "force_pallas", "k_tile"))
def regression_head(features, params, num_labels, force_pallas=False, k_tile=None):
    """features: [B, H]; params: output of prepare_regression_head_params."""
    w1, b1, w2, b2 = params
    orig_dtype = features.dtype
    B, H = features.shape
    Hp, Lp = w1.shape[0], w2.shape[1]
    L = num_labels

    x = features.astype(w1.dtype)   # bf16 activations -> peak MXU rate

    # Degenerate sizes: pallas launch + per-grid-step overhead dominates; let
    # XLA fuse the two GEMMs + tanh instead.
    if not force_pallas and B * Hp < 64 * 1024:
        h = jnp.dot(x, w1[:H, :], preferred_element_type=jnp.float32)
        h = jnp.tanh(h + b1.astype(jnp.float32)).astype(w2.dtype)
        out = jnp.dot(h, w2, preferred_element_type=jnp.float32) + b2.astype(jnp.float32)
        return out[:, :L].astype(orig_dtype)

    # Lane-pad the hidden dim (zeros are numerically inert).
    if Hp != H:
        x = jnp.pad(x, ((0, 0), (0, Hp - H)))

    # Batch tile: divisor-aware (minimize pad waste) and >=2 tiles when B
    # allows so v7x megacore can shard the "parallel" axis across both cores.
    n_tiles = max(_cdiv(B, 512), 2 if B > 16 else 1)
    TB = min(512, _round_up(_cdiv(B, n_tiles), 16))
    Bp = _round_up(B, TB)
    if Bp != B:
        x = jnp.pad(x, ((0, Bp - B), (0, 0)))

    xdt = x.dtype.itemsize
    pdt = w1.dtype.itemsize
    odt = x.dtype.itemsize            # bf16 writeback halves output bytes
    itm = lambda a: a.size * a.dtype.itemsize
    resident_w = itm(w1) + itm(b1) + itm(w2) + itm(b2)

    cap = int(0.85 * _vmem_capacity_bytes())   # physical VMEM with headroom
    bf16_tanh = _has_bf16_eup() and w1.dtype == jnp.bfloat16

    cost = pl.CostEstimate(
        flops=2 * Bp * Hp * Hp + 2 * Bp * Hp * Lp,
        transcendentals=Bp * Hp,
        bytes_accessed=Bp * Hp * xdt + resident_w + Bp * Lp * odt,
    )
    out_shape = jax.ShapeDtypeStruct((Bp, Lp), x.dtype)

    use_ktiled = (k_tile is not None) or (resident_w > cap // 2)

    if not use_ktiled:
        # Resident-weight path: weights/biases stay in VMEM across batch tiles.
        need = (resident_w
                + 2 * (TB * Hp * xdt + TB * Lp * odt)                 # dbl-buffered tiles
                + TB * Hp * 4 + TB * Lp * 4 + TB * Hp * xdt)          # f32 h, f32 acc, h cast
        vmem_limit = int(min(max(int(need * 1.25), 32 << 20), cap))
        out_padded = pl.pallas_call(
            functools.partial(_rh_kernel_resident, bf16_tanh=bf16_tanh),
            out_shape=out_shape,
            grid=(Bp // TB,),
            in_specs=[
                pl.BlockSpec((TB, Hp), lambda i: (i, 0)),   # activations: batch-tiled
                pl.BlockSpec((Hp, Hp), lambda i: (0, 0)),   # dense weight: resident
                pl.BlockSpec((1, Hp), lambda i: (0, 0)),    # dense bias:   resident
                pl.BlockSpec((Hp, Lp), lambda i: (0, 0)),   # out_proj weight: resident
                pl.BlockSpec((1, Lp), lambda i: (0, 0)),    # out_proj bias:   resident
            ],
            out_specs=pl.BlockSpec((TB, Lp), lambda i: (i, 0)),
            compiler_params=pltpu.CompilerParams(
                dimension_semantics=("parallel",),
                vmem_limit_bytes=vmem_limit,
            ),
            cost_estimate=cost,
        )(x, w1, b1, w2, b2)
    else:
        # Hidden-dim tiled path: per-step weight residency is Hp*THk + THk*Lp,
        # so large H fits v7x's 64 MiB VMEM; single pass over x per batch tile.
        if k_tile is not None:
            THk = int(k_tile)
        else:
            THk = 128
            for cand in (1024, 512, 256, 128):
                if cand <= Hp and Hp % cand == 0:
                    need = (2 * (Hp * cand + cand * Lp) * pdt + itm(b1) + itm(b2)
                            + 2 * (TB * Hp * xdt + TB * Lp * odt)
                            + TB * Lp * 4 + TB * cand * 4 + TB * cand * xdt)
                    if need * 1.25 <= cap:
                        THk = cand
                        break
        assert Hp % THk == 0, (Hp, THk)
        need = (2 * (Hp * THk + THk * Lp) * pdt + itm(b1) + itm(b2)
                + 2 * (TB * Hp * xdt + TB * Lp * odt)
                + TB * Lp * 4 + TB * THk * 4 + TB * THk * xdt)
        vmem_limit = int(min(max(int(need * 1.25), 32 << 20), cap))
        out_padded = pl.pallas_call(
            functools.partial(_rh_kernel_ktiled, bf16_tanh=bf16_tanh),
            out_shape=out_shape,
            grid=(Bp // TB, Hp // THk),
            in_specs=[
                pl.BlockSpec((TB, Hp), lambda i, k: (i, 0)),    # x: resident across k
                pl.BlockSpec((Hp, THk), lambda i, k: (0, k)),   # dense weight slab
                pl.BlockSpec((1, THk), lambda i, k: (0, k)),    # dense bias slab
                pl.BlockSpec((THk, Lp), lambda i, k: (k, 0)),   # out_proj weight slab
                pl.BlockSpec((1, Lp), lambda i, k: (0, 0)),     # out_proj bias
            ],
            out_specs=pl.BlockSpec((TB, Lp), lambda i, k: (i, 0)),
            scratch_shapes=[pltpu.VMEM((TB, Lp), jnp.float32)],
            compiler_params=pltpu.CompilerParams(
                dimension_semantics=("parallel", "arbitrary"),
                vmem_limit_bytes=vmem_limit,
            ),
            cost_estimate=cost,
        )(x, w1, b1, w2, b2)

    return out_padded[:B, :L].astype(orig_dtype)


if __name__ == "__main__":
    # config implied by the module: hidden_size=32, num_labels=4, batch=2
    B, H, L = 2, 32, 4

    key = jax.random.PRNGKey(0)
    k_x, k_w1, k_b1, k_w2, k_b2 = jax.random.split(key, 5)

    features = jax.random.normal(k_x, (B, H), dtype=jnp.float32)
    # torch nn.Linear layout: weight is [out_features, in_features]
    dense_w = jax.random.normal(k_w1, (H, H), dtype=jnp.float32) * 0.1
    dense_b = jax.random.normal(k_b1, (H,), dtype=jnp.float32) * 0.1
    out_w = jax.random.normal(k_w2, (L, H), dtype=jnp.float32) * 0.1
    out_b = jax.random.normal(k_b2, (L,), dtype=jnp.float32) * 0.1

    params, num_labels = prepare_regression_head_params(dense_w, dense_b, out_w, out_b)

    def ref_fn(f, dw, db, ow, ob):
        return jnp.tanh(f @ dw.T + db) @ ow.T + ob

    # 1) small config forced through the resident-weight Pallas path
    out = jax.block_until_ready(
        regression_head(features, params, num_labels, force_pallas=True))
    ref = ref_fn(features, dense_w, dense_b, out_w, out_b)
    assert out.shape == (B, L), out.shape
    assert jnp.allclose(out, ref, atol=5e-2, rtol=5e-2), "resident-path mismatch"

    # 2) auto-dispatch (this degenerate size takes the fused XLA fallback)
    out_auto = jax.block_until_ready(regression_head(features, params, num_labels))
    assert jnp.allclose(out_auto, ref, atol=5e-2, rtol=5e-2), "fallback mismatch"

    # 3) exercise the hidden-dim-tiled path (the large-H / v7x VMEM fallback)
    B2, H2 = 64, 256
    k2 = jax.random.split(jax.random.PRNGKey(1), 5)
    f2 = jax.random.normal(k2[0], (B2, H2), dtype=jnp.float32)
    dw2 = jax.random.normal(k2[1], (H2, H2), dtype=jnp.float32) * 0.05
    db2 = jax.random.normal(k2[2], (H2,), dtype=jnp.float32) * 0.05
    ow2 = jax.random.normal(k2[3], (L, H2), dtype=jnp.float32) * 0.05
    ob2 = jax.random.normal(k2[4], (L,), dtype=jnp.float32) * 0.05
    params2, _ = prepare_regression_head_params(dw2, db2, ow2, ob2)
    out2 = jax.block_until_ready(
        regression_head(f2, params2, L, force_pallas=True, k_tile=128))
    ref2 = ref_fn(f2, dw2, db2, ow2, ob2)
    assert out2.shape == (B2, L), out2.shape
    assert jnp.allclose(out2, ref2, atol=5e-2, rtol=5e-2), "k-tiled-path mismatch"

    print("KERNEL_OK")
</pallas_src>

<mosaic_0001>
module attributes {stable_mosaic.version = 11 : i64} {
  func.func @_rh_kernel_resident(%arg0: i32, %arg1: memref<16x128xbf16, #tpu.memory_space<vmem>>, %arg2: memref<128x128xbf16, #tpu.memory_space<vmem>>, %arg3: memref<1x128xbf16, #tpu.memory_space<vmem>>, %arg4: memref<128x128xbf16, #tpu.memory_space<vmem>>, %arg5: memref<1x128xbf16, #tpu.memory_space<vmem>>, %arg6: memref<16x128xbf16, #tpu.memory_space<vmem>>) attributes {dimension_semantics = [#tpu.dimension_semantics<parallel>], iteration_bounds = array<i64: 1>, scalar_prefetch = 0 : i64, scratch_operands = 0 : i64, tpu.core_type = #tpu.core_type<tc>, window_params = [{transform_indices = @transform_0, window_bounds = array<i64: 16, 128>}, {pipeline_mode = #tpu.pipeline_mode<synchronous>, transform_indices = @transform_1, window_bounds = array<i64: 128, 128>}, {pipeline_mode = #tpu.pipeline_mode<synchronous>, transform_indices = @transform_2, window_bounds = array<i64: 1, 128>}, {pipeline_mode = #tpu.pipeline_mode<synchronous>, transform_indices = @transform_3, window_bounds = array<i64: 128, 128>}, {pipeline_mode = #tpu.pipeline_mode<synchronous>, transform_indices = @transform_4, window_bounds = array<i64: 1, 128>}, {transform_indices = @transform_5, window_bounds = array<i64: 16, 128>}]} {
    %c0 = arith.constant 0 : index
    %c0_0 = arith.constant 0 : index
    %0 = vector.load %arg1[%c0, %c0_0] : memref<16x128xbf16, #tpu.memory_space<vmem>>, vector<16x128xbf16>
    %c0_1 = arith.constant 0 : index
    %c0_2 = arith.constant 0 : index
    %1 = vector.load %arg2[%c0_1, %c0_2] : memref<128x128xbf16, #tpu.memory_space<vmem>>, vector<128x128xbf16>
    %cst = arith.constant dense<0.000000e+00> : vector<16x128xf32>
    %2 = tpu.matmul %0, %1, %cst {dimension_numbers = #tpu.dot_dimension_numbers<[1], [0], [0], [1], [0, 0, 1, 1], [], []>} : vector<16x128xbf16>, vector<128x128xbf16>, vector<16x128xf32> -> vector<16x128xf32>
    %c0_3 = arith.constant 0 : index
    %c0_4 = arith.constant 0 : index
    %3 = vector.load %arg3[%c0_3, %c0_4] : memref<1x128xbf16, #tpu.memory_space<vmem>>, vector<1x128xbf16>
    %4 = arith.extf %3 : vector<1x128xbf16> to vector<1x128xf32>
    %5 = vector.broadcast %4 : vector<1x128xf32> to vector<16x128xf32>
    %6 = arith.addf %2, %5 : vector<16x128xf32>
    %7 = math.tanh %6 : vector<16x128xf32>
    %8 = arith.truncf %7 : vector<16x128xf32> to vector<16x128xbf16>
    %c0_5 = arith.constant 0 : index
    %c0_6 = arith.constant 0 : index
    %9 = vector.load %arg4[%c0_5, %c0_6] : memref<128x128xbf16, #tpu.memory_space<vmem>>, vector<128x128xbf16>
    %cst_7 = arith.constant dense<0.000000e+00> : vector<16x128xf32>
    %10 = tpu.matmul %8, %9, %cst_7 {dimension_numbers = #tpu.dot_dimension_numbers<[1], [0], [0], [1], [0, 0, 1, 1], [], []>} : vector<16x128xbf16>, vector<128x128xbf16>, vector<16x128xf32> -> vector<16x128xf32>
    %c0_8 = arith.constant 0 : index
    %c0_9 = arith.constant 0 : index
    %11 = vector.load %arg5[%c0_8, %c0_9] : memref<1x128xbf16, #tpu.memory_space<vmem>>, vector<1x128xbf16>
    %12 = arith.extf %11 : vector<1x128xbf16> to vector<1x128xf32>
    %13 = vector.broadcast %12 : vector<1x128xf32> to vector<16x128xf32>
    %14 = arith.addf %10, %13 : vector<16x128xf32>
    %15 = arith.truncf %14 : vector<16x128xf32> to vector<16x128xbf16>
    %c0_10 = arith.constant 0 : index
    %c0_11 = arith.constant 0 : index
    %16 = vector.load %arg6[%c0_10, %c0_11] : memref<16x128xbf16, #tpu.memory_space<vmem>>, vector<16x128xbf16>
    tpu.vector_store %arg6[%c0_10, %c0_11], %15 {strides = array<i32>} : memref<16x128xbf16, #tpu.memory_space<vmem>>, vector<16x128xbf16>,
    return
  }
  func.func @transform_0(%arg0: i32) -> (i32, i32) {
    %c0_i32 = arith.constant 0 : i32
    %c0_i32_0 = arith.constant 0 : i32
    return %arg0, %c0_i32 : i32, i32
  }
  func.func @transform_1(%arg0: i32) -> (i32, i32) {
    %c0_i32 = arith.constant 0 : i32
    %c0_i32_0 = arith.constant 0 : i32
    %c0_i32_1 = arith.constant 0 : i32
    return %c0_i32, %c0_i32_0 : i32, i32
  }
  func.func @transform_2(%arg0: i32) -> (i32, i32) {
    %c0_i32 = arith.constant 0 : i32
    %c0_i32_0 = arith.constant 0 : i32
    %c0_i32_1 = arith.constant 0 : i32
    return %c0_i32, %c0_i32_0 : i32, i32
  }
  func.func @transform_3(%arg0: i32) -> (i32, i32) {
    %c0_i32 = arith.constant 0 : i32
    %c0_i32_0 = arith.constant 0 : i32
    %c0_i32_1 = arith.constant 0 : i32
    return %c0_i32, %c0_i32_0 : i32, i32
  }
  func.func @transform_4(%arg0: i32) -> (i32, i32) {
    %c0_i32 = arith.constant 0 : i32
    %c0_i32_0 = arith.constant 0 : i32
    %c0_i32_1 = arith.constant 0 : i32
    return %c0_i32, %c0_i32_0 : i32, i32
  }
  func.func @transform_5(%arg0: i32) -> (i32, i32) {
    %c0_i32 = arith.constant 0 : i32
    %c0_i32_0 = arith.constant 0 : i32
    return %arg0, %c0_i32 : i32, i32
  }
}

</mosaic_0001>

<bundles_post_ra>
// kernel: regression_head.1
= control target key start
LH: loop header
LB: loop body
LE: loop exit
PB: predicated region body
PF: predicated region fallthrough
CT: control target
= control target key end

     0   :  { %10 = vsyncpa [#allocation3], 0  ;;  %s529_s0 = inlined_call_operand.vmem [shape: bf16[16,128], index: 0, kind: input, shape index: {}]   ;;  %s530_s1 = inlined_call_operand.hbm [shape: bf16[128,128], index: 1, kind: input, shape index: {}]   ;;  %s531_s2 = inlined_call_operand.vmem [shape: bf16[1,128], index: 2, kind: input, shape index: {}]   ;;  %s532_s3 = inlined_call_operand.hbm [shape: bf16[128,128], index: 3, kind: input, shape index: {}]   ;;  %s533_s4 = inlined_call_operand.vmem [shape: bf16[1,128], index: 4, kind: input, shape index: {}]   ;;  %s534_s5 = inlined_call_operand.vmem [shape: bf16[16,128], index: 5, kind: output, shape index: {}]  }
   0x1   :  { %11 = vsyncpa [#allocation5], 0  ;;  %s457_s18 = smov [#allocation2]   ;;  %s409_s22 = scalar_lea.hbm %s530_s1, 1024 }
   0x2   :  { %s19_s19 = sshll.u32 %s457_s18, 4  ;;  %p410_p0 = scmp.ne.s32.totalorder %s530_s1, %s409_s22  ;;  %s20_s19 = int_to_ptr.vmem [resolvable:$true] %s19_s19 }
   0x3   :  { %p413_p1 = scmp.lt.u32.totalorder %s409_s22, %s530_s1 }
   0x5   :  { %p415_p2 = pnand %p413_p1, %p410_p0 }
   0x7   :  { %418 = shalt.err (!%p415_p2)
}
   0x8   :  { %s419_s27 = scalar_lea.vmem %s20_s19, 1024  ;;  %p424_p4 = scmp.lt.s32.totalorder %s20_s19, %s20_s19 }
   0x9   :  { %p420_p3 = scmp.ne.s32.totalorder %s20_s19, %s419_s27  ;;  %p425_p5 = scmp.lt.s32.totalorder %s419_s27, %s419_s27 }
   0xb   :  { %p426_p6 = por %p425_p5, %p424_p4 }
   0xd   :  { %p427_p7 = pnand %p426_p6, %p420_p3 }
   0xf   :  { %430 = shalt.err (!%p427_p7)
}
  0x10   :  { %s458_s28 = smov 64   ;;  %s459_s29 = smov 4  }
  0x11   :  { %25 = dma.hbm_to_vmem [thread:$0]  %s530_s1, 1024, %s20_s19, [#allocation3], %s458_s28, %s458_s28, %s459_s29  }
  0x12   :  { %s460_s7 = smov [#allocation4]   ;;  %s431_s11 = scalar_lea.hbm %s532_s3, 1024 }
  0x13   :  { %s33_s8 = sshll.u32 %s460_s7, 4  ;;  %p432_p8 = scmp.ne.s32.totalorder %s532_s3, %s431_s11  ;;  %s34_s8 = int_to_ptr.vmem [resolvable:$true] %s33_s8 }
  0x14   :  { %p435_p9 = scmp.lt.u32.totalorder %s431_s11, %s532_s3 }
  0x16   :  { %p437_p10 = pnand %p435_p9, %p432_p8 }
  0x18   :  { %440 = shalt.err (!%p437_p10)
}
  0x19   :  { %s441_s16 = scalar_lea.vmem %s34_s8, 1024  ;;  %p446_p12 = scmp.lt.s32.totalorder %s34_s8, %s34_s8 }
  0x1a   :  { %p442_p11 = scmp.ne.s32.totalorder %s34_s8, %s441_s16  ;;  %p447_p13 = scmp.lt.s32.totalorder %s441_s16, %s441_s16 }
  0x1c   :  { %p448_p0 = por %p447_p13, %p446_p12 }
  0x1e   :  { %p449_p1 = pnand %p448_p0, %p442_p11 }
  0x20   :  { %452 = shalt.err (!%p449_p1)
}
  0x21   :  { %39 = dma.hbm_to_vmem [thread:$0]  %s532_s3, 1024, %s34_s8, [#allocation5], %s458_s28, %s458_s28, %s459_s29  }
  0x22   :  { %453 = dma.done.wait [#allocation3], 1024  }
  0x23   :  { %454 = vsyncadd [#allocation3], 4294966272 }
  0x24   :  { %455 = dma.done.wait [#allocation5], 1024  }
  0x25   :  { %456 = vsyncadd [#allocation5], 4294966272  ;;  %v461_v0 = vmov 0.0   ;;  %vm462_vm0 = vmmov 0   ;;  %v388_v1 = vld [vmem:[#allocation2] sm:$0xff]   ;;  %v389_v2 = vld [vmem:[#allocation2 + $0x8] sm:$0xff]   ;;  %v69_v18 = vlaneseq }
  0x26   :  { %342 = vmatprep.subr.bf16.mxu0 %v461_v0  ;;  %358 = vmatprep.mubr.msk.bf16.mxu0 %vm462_vm0, %v461_v0  ;;  %v390_v3 = vld [vmem:[#allocation2 + $0x10] sm:$0xff]   ;;  %v397_v4 = vld [vmem:[#allocation4] sm:$0xff]   ;;  %v391_v5 = vld [vmem:[#allocation2 + $0x18] sm:$0xff]  }
  0x27   :  { %362 = vmatprep.subr.bf16.mxu1 %v461_v0  ;;  %378 = vmatprep.mubr.msk.bf16.mxu1 %vm462_vm0, %v461_v0  ;;  %v398_v6 = vld [vmem:[#allocation4 + $0x8] sm:$0xff]   ;;  %v392_v7 = vld [vmem:[#allocation2 + $0x20] sm:$0xff]   ;;  %v399_v8 = vld [vmem:[#allocation4 + $0x10] sm:$0xff]   ;;  %v70_v19 = vshrl.u32 %v69_v18, 7 }
  0x28   :  { %343 = vmatpush3.bf16.msra.mxu0 %v388_v1  ;;  %363 = vmatpush3.bf16.msra.mxu1 %v397_v4  ;;  %v393_v9 = vld [vmem:[#allocation2 + $0x28] sm:$0xff]   ;;  %v400_v10 = vld [vmem:[#allocation4 + $0x18] sm:$0xff]   ;;  %v394_v11 = vld [vmem:[#allocation2 + $0x30] sm:$0xff]  }
  0x29   :  { %344 = vmatprep.subr.bf16.mxu0 %v461_v0  ;;  %364 = vmatprep.subr.bf16.mxu1 %v461_v0  ;;  %v395_v12 = vld [vmem:[#allocation2 + $0x38] sm:$0xff]   ;;  %v396_v13 = vld [vmem:[%s529_s0] sm:$0xff]   ;;  %v402_v15 = vld [vmem:[#allocation4 + $0x28] sm:$0xff]   ;;  %v71_v22 = vsub.s32 0, %v70_v19 }
  0x2a   :  { %v401_v14 = vld [vmem:[#allocation4 + $0x20] sm:$0xff]   ;;  %v403_v16 = vld [vmem:[#allocation4 + $0x30] sm:$0xff]   ;;  %v404_v17 = vld [vmem:[#allocation4 + $0x38] sm:$0xff]  }
  0x2b   :  { %v67_v20 = vld [vmem:[%s531_s2] sm:$0x1] }
  0x2c   :  { %345 = vmatpush3.bf16.msra.mxu0 %v389_v2  ;;  %365 = vmatpush3.bf16.msra.mxu1 %v398_v6  ;;  %v68_v21 = vunpack.c.l.bf16 %v67_v20  ;;  %v187_v33 = vld [vmem:[%s533_s4] sm:$0x1] }
  0x2d   :  { %346 = vmatprep.subr.bf16.mxu0 %v461_v0  ;;  %366 = vmatprep.subr.bf16.mxu1 %v461_v0  ;;  %v188_v34 = vunpack.c.l.bf16 %v187_v33 }
  0x2e   :  { %v72_v23 = vrot.slane %v68_v21, %v71_v22 }
  0x2f   :  { %v192_v35 = vrot.slane %v188_v34, %v71_v22 }
  0x30   :  { %347 = vmatpush3.bf16.msra.mxu0 %v390_v3  ;;  %367 = vmatpush3.bf16.msra.mxu1 %v399_v8 }
  0x31   :  { %348 = vmatprep.subr.bf16.mxu0 %v461_v0  ;;  %368 = vmatprep.subr.bf16.mxu1 %v461_v0 }
  0x34   :  { %349 = vmatpush3.bf16.msra.mxu0 %v391_v5  ;;  %369 = vmatpush3.bf16.msra.mxu1 %v400_v10 }
  0x35   :  { %350 = vmatprep.subr.bf16.mxu0 %v461_v0  ;;  %370 = vmatprep.subr.bf16.mxu1 %v461_v0 }
  0x38   :  { %351 = vmatpush3.bf16.msra.mxu0 %v392_v7  ;;  %371 = vmatpush3.bf16.msra.mxu1 %v401_v14 }
  0x39   :  { %352 = vmatprep.subr.bf16.mxu0 %v461_v0  ;;  %372 = vmatprep.subr.bf16.mxu1 %v461_v0 }
  0x3c   :  { %353 = vmatpush3.bf16.msra.mxu0 %v393_v9  ;;  %373 = vmatpush3.bf16.msra.mxu1 %v402_v15 }
  0x3d   :  { %354 = vmatprep.subr.bf16.mxu0 %v461_v0  ;;  %374 = vmatprep.subr.bf16.mxu1 %v461_v0 }
  0x40   :  { %355 = vmatpush3.bf16.msra.mxu0 %v394_v11  ;;  %375 = vmatpush3.bf16.msra.mxu1 %v403_v16 }
  0x41   :  { %356 = vmatprep.subr.bf16.mxu0 %v461_v0  ;;  %376 = vmatprep.subr.bf16.mxu1 %v461_v0 }
  0x44   :  { %357 = vmatpush3.bf16.msra.mxu0 %v395_v12  ;;  %377 = vmatpush3.bf16.msra.mxu1 %v404_v17 }
  0x47   :  { %359 = vmatmul.mubr.bf16.vlgmr.msra.gmra.mrb[0].mxu0 %v396_v13 }
 0x11a   :  { %v161_v24 = vpop.f32.mrb[0].mxu0 }
 0x11b   :  { %v162_v25 = vadd.f32 %v161_v24, %v72_v23  ;;  %v360_v26 = vpop.f32.mrb[1].mxu0 }
 0x11c   :  { %v164_v27 = vpop.f32.mrb[2].mxu0 }
 0x11d   :  { %v165_v28 = vadd.f32 %v164_v27, %v72_v23  ;;  %v361_v29 = vpop.f32.mrb[3].mxu0  ;;  %405 = vtanh.f32 %v162_v25 }
 0x11f   :  { %407 = vtanh.f32 %v165_v28 }
 0x127   :  { %v406_v30 = vpop.eup %405 }
 0x129   :  { %v408_v31 = vpop.eup %407 }
 0x12a   :  { %v170_v32 = vpack.c.bf16 %v408_v31, %v406_v30 }
 0x12c   :  { %379 = vmatmul.mubr.bf16.vlgmr.msra.gmra.mrb[0].mxu1 %v170_v32 }
 0x1ff   :  { %v275_v36 = vpop.f32.mrb[0].mxu1 }
 0x200   :  { %v380_v37 = vpop.f32.mrb[1].mxu1  ;;  %v276_v39 = vadd.f32 %v275_v36, %v192_v35 }
 0x201   :  { %v278_v38 = vpop.f32.mrb[2].mxu1 }
 0x202   :  { %v279_v40 = vadd.f32 %v278_v38, %v192_v35  ;;  %v381_v41 = vpop.f32.mrb[3].mxu1 }
 0x204   :  { %v322_v42 = vpack.c.bf16 %v279_v40, %v276_v39 }
 0x206   :  { %323 = vst [vmem:[%s534_s5] sm:$0xff] %v322_v42  }
 0x207   :  { %296 = vsyncpa [#allocation3], 1 }
 0x208   :  { %297 = vsyncpa [#allocation5], 1 }

</bundles_post_ra>
